<compile_context>
chip_gen: v5e
topology: v5e:2x2
jax: 0.10.0
libtpu: 0.0.40
codegen_flags: <defaults>
</compile_context>

<pallas_src>
import functools

import jax
import jax.numpy as jnp
import numpy as np
from jax import lax
from jax.experimental import pallas as pl
from jax.experimental.pallas import tpu as pltpu

EPS = 1e-12


# ----------------------------------------------------------------------------
# Fused kernel: power iteration + im2col + conv matmul + (1/sigma, +bias) epilogue
# ----------------------------------------------------------------------------
def sn_conv_fused_kernel(w2d_ref, u_ref, wconv_ref, x_ref, b_ref,
                         o_ref, u_out_ref, v_out_ref, col_ref,
                         *, KH, KW, Wp, Ho, cpad):
    # w2d_ref:   (Cout, Wd)        PyTorch-order flattening w.view(Cout, -1)
    # u_ref:     (1, Cout)
    # wconv_ref: (Cout, K)         im2col row order (kh, kw, ci)  (same data, reordered)
    # x_ref:     (N, Cin, Lx)      padded image flattened to (Hp*Wp), zero-padded to Lx lanes
    # b_ref:     (Cout, 1)
    # o_ref:     (N, Cout, Ho*Wp)  channels-first output (Wp-strided rows, cropped in glue)
    # col_ref:   (K, N*cpad)       VMEM im2col scratch, spatial pixels on the lane axis
    N, Cin, _ = x_ref.shape
    row_span = Ho * Wp

    # ---- power iteration (one step), both contractions on the MXU ----
    w = w2d_ref[...]                                                     # (Cout, Wd)
    u = u_ref[...]                                                       # (1, Cout)
    v_raw = jnp.dot(u, w, preferred_element_type=jnp.float32)            # (1, Wd)
    v = v_raw / (jnp.sqrt(jnp.sum(v_raw * v_raw)) + EPS)
    wv = lax.dot_general(v, w, (((1,), (1,)), ((), ())),
                         preferred_element_type=jnp.float32)             # (1, Cout)
    wv_norm = jnp.sqrt(jnp.sum(wv * wv))
    u_out_ref[...] = wv / (wv_norm + EPS)
    v_out_ref[...] = v
    # sigma = u_new . (W v) == ||W v|| (up to the 1e-12 eps); hoisted above the im2col.
    inv_sigma = 1.0 / wv_norm
    b = b_ref[...]                                                       # (Cout, 1)

    # ---- zero the per-image alignment tails of the scratch (never read back) ----
    pad_tail = cpad - row_span
    if pad_tail:
        zeros_tail = jnp.zeros((col_ref.shape[0], pad_tail), jnp.float32)
        for n in range(N):
            col_ref[:, n * cpad + row_span:(n + 1) * cpad] = zeros_tail

    # ---- transposed im2col: every tap is one contiguous, lane-dense copy ----
    # col[(kh*KW+kw)*Cin + ci, n*cpad + ho*Wp + wo] = xpad[n, ci, ho+kh, wo+kw]
    for n in range(N):
        for kh in range(KH):
            for kw in range(KW):
                r0 = (kh * KW + kw) * Cin
                s = kh * Wp + kw
                col_ref[r0:r0 + Cin, n * cpad:n * cpad + row_span] = \
                    x_ref[n, :, s:s + row_span]

    # ---- single (Cout, K) x (K, N*cpad) MXU matmul ----
    acc = lax.dot_general(
        wconv_ref[...], col_ref[...],
        dimension_numbers=(((1,), (0,)), ((), ())),
        preferred_element_type=jnp.float32)                              # (Cout, N*cpad)

    y = acc * inv_sigma + b
    for n in range(N):
        o_ref[n] = y[:, n * cpad:n * cpad + row_span].astype(o_ref.dtype)


# ----------------------------------------------------------------------------
# SpectralNorm(Conv2d).forward equivalent
# ----------------------------------------------------------------------------
def spectral_norm_conv_forward(x_nchw, w_bar_oihw, bias, u_vec):
    Cout, Cin, KH, KW = w_bar_oihw.shape
    N, _, H, W = x_nchw.shape
    Wd = Cin * KH * KW

    # Weight in both orders (tiny arrays): PyTorch flatten order for the power iteration,
    # (kh, kw, ci) im2col row order for the conv matmul.
    w2d = w_bar_oihw.reshape(Cout, Wd).astype(jnp.float32)
    w_conv = jnp.transpose(w_bar_oihw, (0, 2, 3, 1)).reshape(Cout, Wd).astype(jnp.float32)
    u_row = u_vec.reshape(1, Cout).astype(jnp.float32)
    b2 = bias.reshape(Cout, 1).astype(jnp.float32)

    # 'same' padding, done directly on NCHW (no layout transpose of the activations).
    ph, pw = KH // 2, KW // 2
    x_pad = jnp.pad(x_nchw, ((0, 0), (0, 0), (ph, ph), (pw, pw)))
    Hp, Wp = H + 2 * ph, W + 2 * pw
    Ho, Wo = Hp - KH + 1, Wp - KW + 1            # == H, W for stride-1 'same'

    # Flatten spatial dims in the glue (free) and zero-pad the lane axis so that every
    # per-tap copy in the kernel is a contiguous slice of length Ho*Wp.
    row_span = Ho * Wp
    max_start = (KH - 1) * Wp + (KW - 1)
    Lx = ((max_start + row_span + 127) // 128) * 128    # flattened input lane length
    cpad = ((row_span + 127) // 128) * 128              # per-image column stride in col
    x_flat = x_pad.reshape(N, Cin, Hp * Wp)
    x_flat = jnp.pad(x_flat, ((0, 0), (0, 0), (0, Lx - Hp * Wp)))

    kernel = functools.partial(sn_conv_fused_kernel,
                               KH=KH, KW=KW, Wp=Wp, Ho=Ho, cpad=cpad)
    out_shapes = (
        jax.ShapeDtypeStruct((N, Cout, row_span), x_nchw.dtype),   # conv output (Wp-strided)
        jax.ShapeDtypeStruct((1, Cout), jnp.float32),              # u_new
        jax.ShapeDtypeStruct((1, Wd), jnp.float32),                # v_new
    )
    y_flat, u_new, v_new = pl.pallas_call(
        kernel,
        out_shape=out_shapes,
        grid=(1,),
        in_specs=[
            pl.BlockSpec((Cout, Wd), lambda i: (0, 0)),
            pl.BlockSpec((1, Cout), lambda i: (0, 0)),
            pl.BlockSpec((Cout, Wd), lambda i: (0, 0)),
            pl.BlockSpec((N, Cin, Lx), lambda i: (0, 0, 0)),
            pl.BlockSpec((Cout, 1), lambda i: (0, 0)),
        ],
        out_specs=[
            pl.BlockSpec((N, Cout, row_span), lambda i: (0, 0, 0)),
            pl.BlockSpec((1, Cout), lambda i: (0, 0)),
            pl.BlockSpec((1, Wd), lambda i: (0, 0)),
        ],
        scratch_shapes=[pltpu.VMEM((Wd, N * cpad), jnp.float32)],
        compiler_params=pltpu.CompilerParams(
            dimension_semantics=("arbitrary",)),
    )(w2d, u_row, w_conv, x_flat, b2)

    # Rows are Wp-strided; crop the pad columns and reshape straight to NCHW (no transpose).
    y_nchw = y_flat.reshape(N, Cout, Ho, Wp)[:, :, :, :Wo]
    return y_nchw, u_new.reshape(-1), v_new.reshape(-1)


if __name__ == "__main__":
    key = jax.random.PRNGKey(0)
    N, Cin, H, W = 2, 4, 16, 16
    Cout, KH, KW = 8, 3, 3

    k1, k2, k3, k4, k5 = jax.random.split(key, 5)
    # Deterministic synthetic parameters (nn.Conv2d weight/bias + SpectralNorm u)
    w_bar = jax.random.normal(k1, (Cout, Cin, KH, KW), jnp.float32) * 0.1
    bias = jax.random.normal(k2, (Cout,), jnp.float32) * 0.01
    u0 = jax.random.normal(k3, (Cout,), jnp.float32)
    u0 = u0 / (jnp.linalg.norm(u0) + EPS)
    # v parameter of the module is overwritten before use when power_iterations >= 1.
    x_nchw = jax.random.normal(k5, (N, Cin, H, W), jnp.float32)

    y, u_new, v_new = spectral_norm_conv_forward(x_nchw, w_bar, bias, u0)
    jax.block_until_ready(y)

    # Pure-JAX reference check
    w2d = w_bar.reshape(Cout, -1)
    vr = w2d.T @ u0
    vr = vr / (jnp.linalg.norm(vr) + EPS)
    ur = w2d @ vr
    ur = ur / (jnp.linalg.norm(ur) + EPS)
    sigma_ref_val = jnp.dot(ur, w2d @ vr)
    w_scaled = w_bar / sigma_ref_val
    y_ref = lax.conv_general_dilated(
        x_nchw, w_scaled, (1, 1), ((1, 1), (1, 1)),
        dimension_numbers=("NCHW", "OIHW", "NCHW")) + bias.reshape(1, Cout, 1, 1)

    assert np.allclose(np.asarray(y), np.asarray(y_ref), atol=1e-3, rtol=1e-3), \
        "conv output mismatch vs reference"
    assert np.allclose(np.asarray(u_new), np.asarray(ur), atol=1e-3, rtol=1e-3), \
        "u mismatch vs reference"
    assert np.allclose(np.asarray(v_new), np.asarray(vr), atol=1e-3, rtol=1e-3), \
        "v mismatch vs reference"
    print("KERNEL_OK")
</pallas_src>

<mosaic_0001>
module attributes {stable_mosaic.version = 11 : i64} {
  func.func @sn_conv_fused_kernel(%arg0: i32, %arg1: memref<8x36xf32, #tpu.memory_space<vmem>>, %arg2: memref<1x8xf32, #tpu.memory_space<vmem>>, %arg3: memref<8x36xf32, #tpu.memory_space<vmem>>, %arg4: memref<2x4x384xf32, #tpu.memory_space<vmem>>, %arg5: memref<8x1xf32, #tpu.memory_space<vmem>>, %arg6: memref<2x8x288xf32, #tpu.memory_space<vmem>>, %arg7: memref<1x8xf32, #tpu.memory_space<vmem>>, %arg8: memref<1x36xf32, #tpu.memory_space<vmem>>, %arg9: memref<36x768xf32, #tpu.memory_space<vmem>>) attributes {dimension_semantics = [#tpu.dimension_semantics<arbitrary>], iteration_bounds = array<i64: 1>, scalar_prefetch = 0 : i64, scratch_operands = 1 : i64, tpu.core_type = #tpu.core_type<tc>, window_params = [{pipeline_mode = #tpu.pipeline_mode<synchronous>, transform_indices = @transform_0, window_bounds = array<i64: 8, 36>}, {pipeline_mode = #tpu.pipeline_mode<synchronous>, transform_indices = @transform_1, window_bounds = array<i64: 1, 8>}, {pipeline_mode = #tpu.pipeline_mode<synchronous>, transform_indices = @transform_2, window_bounds = array<i64: 8, 36>}, {pipeline_mode = #tpu.pipeline_mode<synchronous>, transform_indices = @transform_3, window_bounds = array<i64: 2, 4, 384>}, {pipeline_mode = #tpu.pipeline_mode<synchronous>, transform_indices = @transform_4, window_bounds = array<i64: 8, 1>}, {pipeline_mode = #tpu.pipeline_mode<synchronous>, transform_indices = @transform_5, window_bounds = array<i64: 2, 8, 288>}, {pipeline_mode = #tpu.pipeline_mode<synchronous>, transform_indices = @transform_6, window_bounds = array<i64: 1, 8>}, {pipeline_mode = #tpu.pipeline_mode<synchronous>, transform_indices = @transform_7, window_bounds = array<i64: 1, 36>}]} {
    %c0 = arith.constant 0 : index
    %c0_0 = arith.constant 0 : index
    %0 = vector.load %arg1[%c0, %c0_0] : memref<8x36xf32, #tpu.memory_space<vmem>>, vector<8x36xf32>
    %c0_1 = arith.constant 0 : index
    %c0_2 = arith.constant 0 : index
    %1 = vector.load %arg2[%c0_1, %c0_2] : memref<1x8xf32, #tpu.memory_space<vmem>>, vector<1x8xf32>
    %cst = arith.constant dense<0.000000e+00> : vector<1x36xf32>
    %2 = tpu.matmul %1, %0, %cst {dimension_numbers = #tpu.dot_dimension_numbers<[1], [0], [0], [1], [0, 0, 1, 1], [], []>} : vector<1x8xf32>, vector<8x36xf32>, vector<1x36xf32> -> vector<1x36xf32>
    %3 = arith.mulf %2, %2 : vector<1x36xf32>
    %4 = vector.shape_cast %3 : vector<1x36xf32> to vector<1x1x36xf32>
    %cst_3 = arith.constant dense<0.000000e+00> : vector<1xf32>
    %5 = vector.multi_reduction <add>, %4, %cst_3 [1, 2] : vector<1x1x36xf32> to vector<1xf32>
    %6 = vector.shape_cast %5 : vector<1xf32> to vector<1x1x1xf32>
    %7 = vector.extract %6[0, 0, 0] : f32 from vector<1x1x1xf32>
    %8 = math.sqrt %7 : f32
    %cst_4 = arith.constant 9.99999996E-13 : f32
    %9 = arith.addf %8, %cst_4 : f32
    %10 = vector.broadcast %9 : f32 to vector<1x36xf32>
    %11 = arith.divf %2, %10 : vector<1x36xf32>
    %cst_5 = arith.constant dense<0.000000e+00> : vector<1x8xf32>
    %12 = tpu.matmul %11, %0, %cst_5 {dimension_numbers = #tpu.dot_dimension_numbers<[1], [1], [0], [0], [0, 0, 1, 0], [], []>} : vector<1x36xf32>, vector<8x36xf32>, vector<1x8xf32> -> vector<1x8xf32>
    %13 = arith.mulf %12, %12 : vector<1x8xf32>
    %14 = vector.shape_cast %13 : vector<1x8xf32> to vector<1x1x8xf32>
    %cst_6 = arith.constant dense<0.000000e+00> : vector<1xf32>
    %15 = vector.multi_reduction <add>, %14, %cst_6 [1, 2] : vector<1x1x8xf32> to vector<1xf32>
    %16 = vector.shape_cast %15 : vector<1xf32> to vector<1x1x1xf32>
    %17 = vector.extract %16[0, 0, 0] : f32 from vector<1x1x1xf32>
    %18 = math.sqrt %17 : f32
    %cst_7 = arith.constant 9.99999996E-13 : f32
    %19 = arith.addf %18, %cst_7 : f32
    %20 = vector.broadcast %19 : f32 to vector<1x8xf32>
    %21 = arith.divf %12, %20 : vector<1x8xf32>
    %c0_8 = arith.constant 0 : index
    %c0_9 = arith.constant 0 : index
    %22 = vector.load %arg7[%c0_8, %c0_9] : memref<1x8xf32, #tpu.memory_space<vmem>>, vector<1x8xf32>
    tpu.vector_store %arg7[%c0_8, %c0_9], %21 {strides = array<i32>} : memref<1x8xf32, #tpu.memory_space<vmem>>, vector<1x8xf32>,
    %c0_10 = arith.constant 0 : index
    %c0_11 = arith.constant 0 : index
    %23 = vector.load %arg8[%c0_10, %c0_11] : memref<1x36xf32, #tpu.memory_space<vmem>>, vector<1x36xf32>
    tpu.vector_store %arg8[%c0_10, %c0_11], %11 {strides = array<i32>} : memref<1x36xf32, #tpu.memory_space<vmem>>, vector<1x36xf32>,
    %cst_12 = arith.constant 1.000000e+00 : f32
    %24 = arith.divf %cst_12, %18 : f32
    %c0_13 = arith.constant 0 : index
    %c0_14 = arith.constant 0 : index
    %25 = vector.load %arg5[%c0_13, %c0_14] : memref<8x1xf32, #tpu.memory_space<vmem>>, vector<8x1xf32>
    %cst_15 = arith.constant 0.000000e+00 : f32
    %26 = vector.broadcast %cst_15 : f32 to vector<36x96xf32>
    %c0_16 = arith.constant 0 : index
    %c288 = arith.constant 288 : index
    %27 = vector.load %arg9[%c0_16, %c288] : memref<36x768xf32, #tpu.memory_space<vmem>>, vector<36x96xf32>
    tpu.vector_store %arg9[%c0_16, %c288], %26 {strides = array<i32>} : memref<36x768xf32, #tpu.memory_space<vmem>>, vector<36x96xf32>,
    %c0_17 = arith.constant 0 : index
    %c672 = arith.constant 672 : index
    %28 = vector.load %arg9[%c0_17, %c672] : memref<36x768xf32, #tpu.memory_space<vmem>>, vector<36x96xf32>
    tpu.vector_store %arg9[%c0_17, %c672], %26 {strides = array<i32>} : memref<36x768xf32, #tpu.memory_space<vmem>>, vector<36x96xf32>,
    %c0_18 = arith.constant 0 : index
    %c0_19 = arith.constant 0 : index
    %c0_20 = arith.constant 0 : index
    %29 = vector.load %arg4[%c0_18, %c0_19, %c0_20] : memref<2x4x384xf32, #tpu.memory_space<vmem>>, vector<1x4x288xf32>
    %30 = vector.shape_cast %29 : vector<1x4x288xf32> to vector<4x288xf32>
    %c0_21 = arith.constant 0 : index
    %c0_22 = arith.constant 0 : index
    %31 = vector.load %arg9[%c0_21, %c0_22] : memref<36x768xf32, #tpu.memory_space<vmem>>, vector<4x288xf32>
    tpu.vector_store %arg9[%c0_21, %c0_22], %30 {strides = array<i32>} : memref<36x768xf32, #tpu.memory_space<vmem>>, vector<4x288xf32>,
    %c0_23 = arith.constant 0 : index
    %c0_24 = arith.constant 0 : index
    %c1 = arith.constant 1 : index
    %32 = vector.load %arg4[%c0_23, %c0_24, %c1] : memref<2x4x384xf32, #tpu.memory_space<vmem>>, vector<1x4x288xf32>
    %33 = vector.shape_cast %32 : vector<1x4x288xf32> to vector<4x288xf32>
    %c4 = arith.constant 4 : index
    %c0_25 = arith.constant 0 : index
    %34 = vector.load %arg9[%c4, %c0_25] : memref<36x768xf32, #tpu.memory_space<vmem>>, vector<4x288xf32>
    tpu.vector_store %arg9[%c4, %c0_25], %33 {strides = array<i32>} : memref<36x768xf32, #tpu.memory_space<vmem>>, vector<4x288xf32>,
    %c0_26 = arith.constant 0 : index
    %c0_27 = arith.constant 0 : index
    %c2 = arith.constant 2 : index
    %35 = vector.load %arg4[%c0_26, %c0_27, %c2] : memref<2x4x384xf32, #tpu.memory_space<vmem>>, vector<1x4x288xf32>
    %36 = vector.shape_cast %35 : vector<1x4x288xf32> to vector<4x288xf32>
    %c8 = arith.constant 8 : index
    %c0_28 = arith.constant 0 : index
    %37 = vector.load %arg9[%c8, %c0_28] : memref<36x768xf32, #tpu.memory_space<vmem>>, vector<4x288xf32>
    tpu.vector_store %arg9[%c8, %c0_28], %36 {strides = array<i32>} : memref<36x768xf32, #tpu.memory_space<vmem>>, vector<4x288xf32>,
    %c0_29 = arith.constant 0 : index
    %c0_30 = arith.constant 0 : index
    %c18 = arith.constant 18 : index
    %38 = vector.load %arg4[%c0_29, %c0_30, %c18] : memref<2x4x384xf32, #tpu.memory_space<vmem>>, vector<1x4x288xf32>
    %39 = vector.shape_cast %38 : vector<1x4x288xf32> to vector<4x288xf32>
    %c12 = arith.constant 12 : index
    %c0_31 = arith.constant 0 : index
    %40 = vector.load %arg9[%c12, %c0_31] : memref<36x768xf32, #tpu.memory_space<vmem>>, vector<4x288xf32>
    tpu.vector_store %arg9[%c12, %c0_31], %39 {strides = array<i32>} : memref<36x768xf32, #tpu.memory_space<vmem>>, vector<4x288xf32>,
    %c0_32 = arith.constant 0 : index
    %c0_33 = arith.constant 0 : index
    %c19 = arith.constant 19 : index
    %41 = vector.load %arg4[%c0_32, %c0_33, %c19] : memref<2x4x384xf32, #tpu.memory_space<vmem>>, vector<1x4x288xf32>
    %42 = vector.shape_cast %41 : vector<1x4x288xf32> to vector<4x288xf32>
    %c16 = arith.constant 16 : index
    %c0_34 = arith.constant 0 : index
    %43 = vector.load %arg9[%c16, %c0_34] : memref<36x768xf32, #tpu.memory_space<vmem>>, vector<4x288xf32>
    tpu.vector_store %arg9[%c16, %c0_34], %42 {strides = array<i32>} : memref<36x768xf32, #tpu.memory_space<vmem>>, vector<4x288xf32>,
    %c0_35 = arith.constant 0 : index
    %c0_36 = arith.constant 0 : index
    %c20 = arith.constant 20 : index
    %44 = vector.load %arg4[%c0_35, %c0_36, %c20] : memref<2x4x384xf32, #tpu.memory_space<vmem>>, vector<1x4x288xf32>
    %45 = vector.shape_cast %44 : vector<1x4x288xf32> to vector<4x288xf32>
    %c20_37 = arith.constant 20 : index
    %c0_38 = arith.constant 0 : index
    %46 = vector.load %arg9[%c20_37, %c0_38] : memref<36x768xf32, #tpu.memory_space<vmem>>, vector<4x288xf32>
    tpu.vector_store %arg9[%c20_37, %c0_38], %45 {strides = array<i32>} : memref<36x768xf32, #tpu.memory_space<vmem>>, vector<4x288xf32>,
    %c0_39 = arith.constant 0 : index
    %c0_40 = arith.constant 0 : index
    %c36 = arith.constant 36 : index
    %47 = vector.load %arg4[%c0_39, %c0_40, %c36] : memref<2x4x384xf32, #tpu.memory_space<vmem>>, vector<1x4x288xf32>
    %48 = vector.shape_cast %47 : vector<1x4x288xf32> to vector<4x288xf32>
    %c24 = arith.constant 24 : index
    %c0_41 = arith.constant 0 : index
    %49 = vector.load %arg9[%c24, %c0_41] : memref<36x768xf32, #tpu.memory_space<vmem>>, vector<4x288xf32>
    tpu.vector_store %arg9[%c24, %c0_41], %48 {strides = array<i32>} : memref<36x768xf32, #tpu.memory_space<vmem>>, vector<4x288xf32>,
    %c0_42 = arith.constant 0 : index
    %c0_43 = arith.constant 0 : index
    %c37 = arith.constant 37 : index
    %50 = vector.load %arg4[%c0_42, %c0_43, %c37] : memref<2x4x384xf32, #tpu.memory_space<vmem>>, vector<1x4x288xf32>
    %51 = vector.shape_cast %50 : vector<1x4x288xf32> to vector<4x288xf32>
    %c28 = arith.constant 28 : index
    %c0_44 = arith.constant 0 : index
    %52 = vector.load %arg9[%c28, %c0_44] : memref<36x768xf32, #tpu.memory_space<vmem>>, vector<4x288xf32>
    tpu.vector_store %arg9[%c28, %c0_44], %51 {strides = array<i32>} : memref<36x768xf32, #tpu.memory_space<vmem>>, vector<4x288xf32>,
    %c0_45 = arith.constant 0 : index
    %c0_46 = arith.constant 0 : index
    %c38 = arith.constant 38 : index
    %53 = vector.load %arg4[%c0_45, %c0_46, %c38] : memref<2x4x384xf32, #tpu.memory_space<vmem>>, vector<1x4x288xf32>
    %54 = vector.shape_cast %53 : vector<1x4x288xf32> to vector<4x288xf32>
    %c32 = arith.constant 32 : index
    %c0_47 = arith.constant 0 : index
    %55 = vector.load %arg9[%c32, %c0_47] : memref<36x768xf32, #tpu.memory_space<vmem>>, vector<4x288xf32>
    tpu.vector_store %arg9[%c32, %c0_47], %54 {strides = array<i32>} : memref<36x768xf32, #tpu.memory_space<vmem>>, vector<4x288xf32>,
    %c1_48 = arith.constant 1 : index
    %c0_49 = arith.constant 0 : index
    %c0_50 = arith.constant 0 : index
    %56 = vector.load %arg4[%c1_48, %c0_49, %c0_50] : memref<2x4x384xf32, #tpu.memory_space<vmem>>, vector<1x4x288xf32>
    %57 = vector.shape_cast %56 : vector<1x4x288xf32> to vector<4x288xf32>
    %c0_51 = arith.constant 0 : index
    %c384 = arith.constant 384 : index
    %58 = vector.load %arg9[%c0_51, %c384] : memref<36x768xf32, #tpu.memory_space<vmem>>, vector<4x288xf32>
    tpu.vector_store %arg9[%c0_51, %c384], %57 {strides = array<i32>} : memref<36x768xf32, #tpu.memory_space<vmem>>, vector<4x288xf32>,
    %c1_52 = arith.constant 1 : index
    %c0_53 = arith.constant 0 : index
    %c1_54 = arith.constant 1 : index
    %59 = vector.load %arg4[%c1_52, %c0_53, %c1_54] : memref<2x4x384xf32, #tpu.memory_space<vmem>>, vector<1x4x288xf32>
    %60 = vector.shape_cast %59 : vector<1x4x288xf32> to vector<4x288xf32>
    %c4_55 = arith.constant 4 : index
    %c384_56 = arith.constant 384 : index
    %61 = vector.load %arg9[%c4_55, %c384_56] : memref<36x768xf32, #tpu.memory_space<vmem>>, vector<4x288xf32>
    tpu.vector_store %arg9[%c4_55, %c384_56], %60 {strides = array<i32>} : memref<36x768xf32, #tpu.memory_space<vmem>>, vector<4x288xf32>,
    %c1_57 = arith.constant 1 : index
    %c0_58 = arith.constant 0 : index
    %c2_59 = arith.constant 2 : index
    %62 = vector.load %arg4[%c1_57, %c0_58, %c2_59] : memref<2x4x384xf32, #tpu.memory_space<vmem>>, vector<1x4x288xf32>
    %63 = vector.shape_cast %62 : vector<1x4x288xf32> to vector<4x288xf32>
    %c8_60 = arith.constant 8 : index
    %c384_61 = arith.constant 384 : index
    %64 = vector.load %arg9[%c8_60, %c384_61] : memref<36x768xf32, #tpu.memory_space<vmem>>, vector<4x288xf32>
    tpu.vector_store %arg9[%c8_60, %c384_61], %63 {strides = array<i32>} : memref<36x768xf32, #tpu.memory_space<vmem>>, vector<4x288xf32>,
    %c1_62 = arith.constant 1 : index
    %c0_63 = arith.constant 0 : index
    %c18_64 = arith.constant 18 : index
    %65 = vector.load %arg4[%c1_62, %c0_63, %c18_64] : memref<2x4x384xf32, #tpu.memory_space<vmem>>, vector<1x4x288xf32>
    %66 = vector.shape_cast %65 : vector<1x4x288xf32> to vector<4x288xf32>
    %c12_65 = arith.constant 12 : index
    %c384_66 = arith.constant 384 : index
    %67 = vector.load %arg9[%c12_65, %c384_66] : memref<36x768xf32, #tpu.memory_space<vmem>>, vector<4x288xf32>
    tpu.vector_store %arg9[%c12_65, %c384_66], %66 {strides = array<i32>} : memref<36x768xf32, #tpu.memory_space<vmem>>, vector<4x288xf32>,
    %c1_67 = arith.constant 1 : index
    %c0_68 = arith.constant 0 : index
    %c19_69 = arith.constant 19 : index
    %68 = vector.load %arg4[%c1_67, %c0_68, %c19_69] : memref<2x4x384xf32, #tpu.memory_space<vmem>>, vector<1x4x288xf32>
    %69 = vector.shape_cast %68 : vector<1x4x288xf32> to vector<4x288xf32>
    %c16_70 = arith.constant 16 : index
    %c384_71 = arith.constant 384 : index
    %70 = vector.load %arg9[%c16_70, %c384_71] : memref<36x768xf32, #tpu.memory_space<vmem>>, vector<4x288xf32>
    tpu.vector_store %arg9[%c16_70, %c384_71], %69 {strides = array<i32>} : memref<36x768xf32, #tpu.memory_space<vmem>>, vector<4x288xf32>,
    %c1_72 = arith.constant 1 : index
    %c0_73 = arith.constant 0 : index
    %c20_74 = arith.constant 20 : index
    %71 = vector.load %arg4[%c1_72, %c0_73, %c20_74] : memref<2x4x384xf32, #tpu.memory_space<vmem>>, vector<1x4x288xf32>
    %72 = vector.shape_cast %71 : vector<1x4x288xf32> to vector<4x288xf32>
    %c20_75 = arith.constant 20 : index
    %c384_76 = arith.constant 384 : index
    %73 = vector.load %arg9[%c20_75, %c384_76] : memref<36x768xf32, #tpu.memory_space<vmem>>, vector<4x288xf32>
    tpu.vector_store %arg9[%c20_75, %c384_76], %72 {strides = array<i32>} : memref<36x768xf32, #tpu.memory_space<vmem>>, vector<4x288xf32>,
    %c1_77 = arith.constant 1 : index
    %c0_78 = arith.constant 0 : index
    %c36_79 = arith.constant 36 : index
    %74 = vector.load %arg4[%c1_77, %c0_78, %c36_79] : memref<2x4x384xf32, #tpu.memory_space<vmem>>, vector<1x4x288xf32>
    %75 = vector.shape_cast %74 : vector<1x4x288xf32> to vector<4x288xf32>
    %c24_80 = arith.constant 24 : index
    %c384_81 = arith.constant 384 : index
    %76 = vector.load %arg9[%c24_80, %c384_81] : memref<36x768xf32, #tpu.memory_space<vmem>>, vector<4x288xf32>
    tpu.vector_store %arg9[%c24_80, %c384_81], %75 {strides = array<i32>} : memref<36x768xf32, #tpu.memory_space<vmem>>, vector<4x288xf32>,
    %c1_82 = arith.constant 1 : index
    %c0_83 = arith.constant 0 : index
    %c37_84 = arith.constant 37 : index
    %77 = vector.load %arg4[%c1_82, %c0_83, %c37_84] : memref<2x4x384xf32, #tpu.memory_space<vmem>>, vector<1x4x288xf32>
    %78 = vector.shape_cast %77 : vector<1x4x288xf32> to vector<4x288xf32>
    %c28_85 = arith.constant 28 : index
    %c384_86 = arith.constant 384 : index
    %79 = vector.load %arg9[%c28_85, %c384_86] : memref<36x768xf32, #tpu.memory_space<vmem>>, vector<4x288xf32>
    tpu.vector_store %arg9[%c28_85, %c384_86], %78 {strides = array<i32>} : memref<36x768xf32, #tpu.memory_space<vmem>>, vector<4x288xf32>,
    %c1_87 = arith.constant 1 : index
    %c0_88 = arith.constant 0 : index
    %c38_89 = arith.constant 38 : index
    %80 = vector.load %arg4[%c1_87, %c0_88, %c38_89] : memref<2x4x384xf32, #tpu.memory_space<vmem>>, vector<1x4x288xf32>
    %81 = vector.shape_cast %80 : vector<1x4x288xf32> to vector<4x288xf32>
    %c32_90 = arith.constant 32 : index
    %c384_91 = arith.constant 384 : index
    %82 = vector.load %arg9[%c32_90, %c384_91] : memref<36x768xf32, #tpu.memory_space<vmem>>, vector<4x288xf32>
    tpu.vector_store %arg9[%c32_90, %c384_91], %81 {strides = array<i32>} : memref<36x768xf32, #tpu.memory_space<vmem>>, vector<4x288xf32>,
    %c0_92 = arith.constant 0 : index
    %c0_93 = arith.constant 0 : index
    %83 = vector.load %arg3[%c0_92, %c0_93] : memref<8x36xf32, #tpu.memory_space<vmem>>, vector<8x36xf32>
    %c0_94 = arith.constant 0 : index
    %c0_95 = arith.constant 0 : index
    %84 = vector.load %arg9[%c0_94, %c0_95] : memref<36x768xf32, #tpu.memory_space<vmem>>, vector<36x768xf32>
    %cst_96 = arith.constant dense<0.000000e+00> : vector<8x768xf32>
    %85 = tpu.matmul %83, %84, %cst_96 {dimension_numbers = #tpu.dot_dimension_numbers<[1], [0], [0], [1], [0, 0, 1, 1], [], []>} : vector<8x36xf32>, vector<36x768xf32>, vector<8x768xf32> -> vector<8x768xf32>
    %86 = vector.broadcast %24 : f32 to vector<8x768xf32>
    %87 = arith.mulf %85, %86 : vector<8x768xf32>
    %88 = vector.broadcast %25 : vector<8x1xf32> to vector<8x768xf32>
    %89 = arith.addf %87, %88 : vector<8x768xf32>
    %90 = vector.extract_strided_slice %89 {offsets = [0, 0], sizes = [8, 288], strides = [1, 1]} : vector<8x768xf32> to vector<8x288xf32>
    %c0_97 = arith.constant 0 : index
    %c0_98 = arith.constant 0 : index
    %c0_99 = arith.constant 0 : index
    %91 = vector.load %arg6[%c0_97, %c0_98, %c0_99] : memref<2x8x288xf32, #tpu.memory_space<vmem>>, vector<1x8x288xf32>
    %92 = vector.shape_cast %91 : vector<1x8x288xf32> to vector<8x288xf32>
    %93 = vector.shape_cast %90 : vector<8x288xf32> to vector<1x8x288xf32>
    tpu.vector_store %arg6[%c0_97, %c0_98, %c0_99], %93 {strides = array<i32>} : memref<2x8x288xf32, #tpu.memory_space<vmem>>, vector<1x8x288xf32>,
    %94 = vector.extract_strided_slice %89 {offsets = [0, 384], sizes = [8, 288], strides = [1, 1]} : vector<8x768xf32> to vector<8x288xf32>
    %c1_100 = arith.constant 1 : index
    %c0_101 = arith.constant 0 : index
    %c0_102 = arith.constant 0 : index
    %95 = vector.load %arg6[%c1_100, %c0_101, %c0_102] : memref<2x8x288xf32, #tpu.memory_space<vmem>>, vector<1x8x288xf32>
    %96 = vector.shape_cast %95 : vector<1x8x288xf32> to vector<8x288xf32>
    %97 = vector.shape_cast %94 : vector<8x288xf32> to vector<1x8x288xf32>
    tpu.vector_store %arg6[%c1_100, %c0_101, %c0_102], %97 {strides = array<i32>} : memref<2x8x288xf32, #tpu.memory_space<vmem>>, vector<1x8x288xf32>,
    return
  }
  func.func @transform_0(%arg0: i32) -> (i32, i32) {
    %c0_i32 = arith.constant 0 : i32
    %c0_i32_0 = arith.constant 0 : i32
    %c0_i32_1 = arith.constant 0 : i32
    return %c0_i32, %c0_i32_0 : i32, i32
  }
  func.func @transform_1(%arg0: i32) -> (i32, i32) {
    %c0_i32 = arith.constant 0 : i32
    %c0_i32_0 = arith.constant 0 : i32
    %c0_i32_1 = arith.constant 0 : i32
    return %c0_i32, %c0_i32_0 : i32, i32
  }
  func.func @transform_2(%arg0: i32) -> (i32, i32) {
    %c0_i32 = arith.constant 0 : i32
    %c0_i32_0 = arith.constant 0 : i32
    %c0_i32_1 = arith.constant 0 : i32
    return %c0_i32, %c0_i32_0 : i32, i32
  }
  func.func @transform_3(%arg0: i32) -> (i32, i32, i32) {
    %c0_i32 = arith.constant 0 : i32
    %c0_i32_0 = arith.constant 0 : i32
    %c0_i32_1 = arith.constant 0 : i32
    %c0_i32_2 = arith.constant 0 : i32
    return %c0_i32, %c0_i32_0, %c0_i32_1 : i32, i32, i32
  }
  func.func @transform_4(%arg0: i32) -> (i32, i32) {
    %c0_i32 = arith.constant 0 : i32
    %c0_i32_0 = arith.constant 0 : i32
    %c0_i32_1 = arith.constant 0 : i32
    return %c0_i32, %c0_i32_0 : i32, i32
  }
  func.func @transform_5(%arg0: i32) -> (i32, i32, i32) {
    %c0_i32 = arith.constant 0 : i32
    %c0_i32_0 = arith.constant 0 : i32
    %c0_i32_1 = arith.constant 0 : i32
    %c0_i32_2 = arith.constant 0 : i32
    return %c0_i32, %c0_i32_0, %c0_i32_1 : i32, i32, i32
  }
  func.func @transform_6(%arg0: i32) -> (i32, i32) {
    %c0_i32 = arith.constant 0 : i32
    %c0_i32_0 = arith.constant 0 : i32
    %c0_i32_1 = arith.constant 0 : i32
    return %c0_i32, %c0_i32_0 : i32, i32
  }
  func.func @transform_7(%arg0: i32) -> (i32, i32) {
    %c0_i32 = arith.constant 0 : i32
    %c0_i32_0 = arith.constant 0 : i32
    %c0_i32_1 = arith.constant 0 : i32
    return %c0_i32, %c0_i32_0 : i32, i32
  }
}

</mosaic_0001>

<bundles_post_ra>
// kernel: tpu_custom_call.1
= control target key start
LH: loop header
LB: loop body
LE: loop exit
PB: predicated region body
PF: predicated region fallthrough
CT: control target
= control target key end

     0   :  { %13 = vsyncpa [#allocation4], 0  ;;  %s1409_s0 = inlined_call_operand.vmem [shape: f32[8,36], index: 0, kind: input, shape index: {}]   ;;  %s1410_s1 = inlined_call_operand.vmem [shape: f32[1,8], index: 1, kind: input, shape index: {}]   ;;  %s1411_s2 = inlined_call_operand.hbm [shape: f32[8,36], index: 2, kind: input, shape index: {}]   ;;  %s1412_s3 = inlined_call_operand.hbm [shape: f32[2,4,384], index: 3, kind: input, shape index: {}]   ;;  %s1413_s4 = inlined_call_operand.vmem [shape: f32[8,1], index: 4, kind: input, shape index: {}]   ;;  %s1414_s5 = inlined_call_operand.hbm [shape: f32[2,8,288], index: 5, kind: output, shape index: {0}]   ;;  %s1415_s6 = inlined_call_operand.hbm [shape: f32[1,8], index: 6, kind: output, shape index: {1}]   ;;  %s1416_s7 = inlined_call_operand.hbm [shape: f32[1,36], index: 7, kind: output, shape index: {2}]  }
   0x1   :  { %14 = vsyncpa [#allocation7], 0 }
   0x2   :  { %15 = vsyncpa [#allocation5], 0 }
   0x3   :  { %16 = vsyncpa [#allocation10], 0  ;;  %s26_s26 = sshll.u32 %s1411_s2, 4  ;;  %s1094_s27 = smov [#allocation3]   ;;  %s27_s26 = int_to_ptr.hbm [resolvable:$true] %s26_s26 }
   0x4   :  { %s28_s28 = sshll.u32 %s1094_s27, 4  ;;  %s36_s8 = sshll.u32 %s1412_s3, 4  ;;  %s29_s28 = int_to_ptr.vmem [resolvable:$true] %s28_s28  ;;  %s37_s8 = int_to_ptr.hbm [resolvable:$true] %s36_s8 }
   0x5   :  { %31 = dma.hbm_to_vmem [thread:$0]  %s27_s26, 128, %s29_s28, [#allocation4]  }
   0x6   :  { %s1095_s9 = smov [#allocation6]   ;;  %s1096_s11 = smov 192  }
   0x7   :  { %s38_s10 = sshll.u32 %s1095_s9, 4  ;;  %s1097_s12 = smov 12   ;;  %s39_s10 = int_to_ptr.vmem [resolvable:$true] %s38_s10 }
   0x8   :  { %44 = dma.hbm_to_vmem [thread:$0]  %s37_s8, 384, %s39_s10, [#allocation7], %s1096_s11, %s1096_s11, %s1097_s12  }
   0x9   :  { %1086 = dma.done.wait [#allocation4], 128  }
   0xa   :  { %1087 = vsyncadd [#allocation4], 4294967168 }
   0xb   :  { %1088 = dma.done.wait [#allocation7], 384  }
   0xc   :  { %1089 = vsyncadd [#allocation7], 4294966912  ;;  %vm57_vm0 = vcmask 64512   ;;  %v1162_v0 = vld [vmem:[%s1409_s0] sm:$0xff]  ;;  %vm82_vm1 = vcmask 286720   ;;  %s1099_s15 = smov 109  }
   0xd   :  { %v56_v1 = vld [vmem:[%s1410_s1] sm:$0x1]  ;;  %76 = vmatpush.msra.mxu0 %v1162_v0  ;;  %v226_v17 = vld [vmem:[#allocation6 + $0x8] sm:$0xf]  ;;  %s1098_s1 = smov 92   ;;  %s1100_s16 = smov 90  }
   0xe   :  { %910 = vmatmul.msk.f32.vlgmr.msra.gmra.mxu0 %vm57_vm0, %v56_v1  ;;  %v225_v12 = vld [vmem:[#allocation6] sm:$0xff]  ;;  %231 = vst [vmem:[#allocation1 + $0x10] ss:$2 sm:$0xff] %v226_v17  ;;  %v243_v21 = vld [vmem:[#allocation6 + $0x8] sm:$0xf]  ;;  %s1101_s17 = smov 108  }
   0xf   :  { %229 = vst [vmem:[#allocation1] ss:$2 sm:$0xff] %v225_v12  ;;  %v270_v24 = vld [vmem:[#allocation6 + $0x8] sm:$0xf]  ;;  %s1102_s18 = smov 126   ;;  %s1103_s19 = smov 110  }
  0x10   :  { %v295_v29 = vld [vmem:[#allocation6 + $0x8] sm:$0xf]  ;;  %v449_v59 = vld [vmem:[#allocation6 + $0x14] sm:$0xf]  ;;  %v1206_v61 = vld [vmem:[#allocation6 + $0xc] sm:$0xff]  ;;  %vm124_vm4 = vcmask 293888  }
  0x11   :  { %v321_v36 = vld [vmem:[#allocation6 + $0x8] sm:$0xf]  ;;  %911 = vmatpush.xpose.msk.msra.mxu1 %vm124_vm4, %v1162_v0  ;;  %v465_v62 = vld [vmem:[#allocation6 + $0x14] sm:$0xf]  ;;  %s1104_s20 = smov 91   ;;  %s1105_s21 = smov 127  }
  0x12   :  { %v346_v45 = vld [vmem:[#allocation6 + $0x8] sm:$0xf]  ;;  %v490_v0 = vld [vmem:[#allocation6 + $0x14] sm:$0xf]  ;;  %vm218_vm9 = vcmask 1043712   ;;  %vm213_vm10 = vcmask 1047808  }
  0x13   :  { %v372_v51 = vld [vmem:[#allocation6 + $0x8] sm:$0xf]  ;;  %vm240_vm11 = vcmask 257024   ;;  %vm387_vm12 = vcmask 752640   ;;  %vm438_vm13 = vcmask 736256   ;;  %vm267_vm14 = vcmask 261124  }
  0x14   :  { %v397_v54 = vld [vmem:[#allocation6 + $0x8] sm:$0xf]  ;;  %vm413_vm15 = vcmask 744448   ;;  %vm336_vm0 = vcmask 891904   ;;  %s1108_s28 = smov [#allocation9]   ;;  %s879_s9 = sshll.u32 %s1415_s6, 4  ;;  %s880_s9 = int_to_ptr.hbm [resolvable:$true] %s879_s9 }
  0x15   :  { %v1181_v20 = vld.sshfl [vmem:[#allocation1 + $0x10] sm:$0xff pattern:$0x75316420]  ;;  %v423_v57 = vld [vmem:[#allocation6 + $0x8] sm:$0xf]  ;;  %s877_s29 = sshll.u32 %s1108_s28, 4  ;;  %s878_s29 = int_to_ptr.vmem [resolvable:$true] %s877_s29 }
  0x16   :  { %v232_v13 = vld.sshfl [vmem:[#allocation1] sm:$0xff pattern:$0x75316420]  ;;  %v233_v14 = vld.sshfl [vmem:[#allocation1 + $0x8] sm:$0xff pattern:$0x75316420] }
  0x17   :  { %247 = vst [vmem:[#allocation1 + $0x1] ss:$2 sm:$0xff] %v225_v12  ;;  %s1109_s10 = smov [#allocation11]   ;;  %s890_s13 = sshll.u32 %s1416_s7, 4  ;;  %s891_s13 = int_to_ptr.hbm [resolvable:$true] %s890_s13 }
  0x18   :  { %238 = vst [vmem:[#allocation2] sm:$0xf] %v232_v13  ;;  %s888_s11 = sshll.u32 %s1109_s10, 4  ;;  %s1110_s7 = smov [#allocation8]   ;;  %s889_s11 = int_to_ptr.vmem [resolvable:$true] %s888_s11 }
  0x19   :  { %239 = vst [vmem:[#allocation2 + $0x8] sm:$0xf] %v233_v14  ;;  %v539_v14 = vld [vmem:[#allocation6 + $0x14] sm:$0xf]  ;;  %s863_s14 = sshll.u32 %s1110_s7, 4  ;;  %s864_s14 = int_to_ptr.vmem [resolvable:$true] %s863_s14 }
  0x1a   :  { %249 = vst [vmem:[#allocation1 + $0x11] ss:$2 sm:$0xff] %v243_v21 }
  0x1e   :  { %v1173_v15 = vld.sshfl [vmem:[#allocation1] sm:$0xff pattern:$0x75316420]  ;;  %v1175_v16 = vld.sshfl [vmem:[#allocation1 + $0x8] sm:$0xff pattern:$0x75316420] }
  0x1f   :  { %273 = vst [vmem:[#allocation1] ss:$2 sm:$0xff] %v225_v12 }
  0x21   :  { %v1187_v25 = vld.sshfl [vmem:[#allocation1 + $0x10] sm:$0xff pattern:$0x75316420] }
  0x22   :  { %275 = vst [vmem:[#allocation1 + $0x10] ss:$2 sm:$0xff] %v270_v24 }
  0x26   :  { %v1177_v18 = vld.sshfl [vmem:[#allocation1] sm:$0xff pattern:$0x75316420]  ;;  %v1179_v19 = vld.sshfl [vmem:[#allocation1 + $0x8] sm:$0xff pattern:$0x75316420] }
  0x27   :  { %299 = vst [vmem:[#allocation1 + $0x1] ss:$2 sm:$0xff] %v225_v12 }
  0x29   :  { %v278_v30 = vld.sshfl [vmem:[#allocation1 + $0x10] sm:$0xff pattern:$0x75316420] }
  0x2a   :  { %301 = vst [vmem:[#allocation1 + $0x11] ss:$2 sm:$0xff] %v295_v29 }
  0x2e   :  { %v1183_v22 = vld.sshfl [vmem:[#allocation1] sm:$0xff pattern:$0x75316420]  ;;  %v1185_v23 = vld.sshfl [vmem:[#allocation1 + $0x8] sm:$0xff pattern:$0x75316420] }
  0x2f   :  { %324 = vst [vmem:[#allocation1] ss:$2 sm:$0xff] %v225_v12 }
  0x31   :  { %v304_v38 = vld.sshfl [vmem:[#allocation1 + $0x10] sm:$0xff pattern:$0x75316420] }
  0x32   :  { %326 = vst [vmem:[#allocation1 + $0x10] ss:$2 sm:$0xff] %v321_v36 }
  0x36   :  { %v1189_v27 = vld.sshfl [vmem:[#allocation1] sm:$0xff pattern:$0x75316420]  ;;  %v1191_v28 = vld.sshfl [vmem:[#allocation1 + $0x8] sm:$0xff pattern:$0x75316420] }
  0x37   :  { %350 = vst [vmem:[#allocation1 + $0x1] ss:$2 sm:$0xff] %v225_v12 }
  0x39   :  { %v329_v47 = vld.sshfl [vmem:[#allocation1 + $0x10] sm:$0xff pattern:$0x75316420] }
  0x3a   :  { %352 = vst [vmem:[#allocation1 + $0x11] ss:$2 sm:$0xff] %v346_v45 }
  0x3e   :  { %v1193_v34 = vld.sshfl [vmem:[#allocation1] sm:$0xff pattern:$0x75316420]  ;;  %v1195_v35 = vld.sshfl [vmem:[#allocation1 + $0x8] sm:$0xff pattern:$0x75316420] }
  0x3f   :  { %375 = vst [vmem:[#allocation1] ss:$2 sm:$0xff] %v225_v12 }
  0x41   :  { %v355_v52 = vld.sshfl [vmem:[#allocation1 + $0x10] sm:$0xff pattern:$0x75316420] }
  0x42   :  { %377 = vst [vmem:[#allocation1 + $0x10] ss:$2 sm:$0xff] %v372_v51 }
  0x46   :  { %v378_v42 = vld.sshfl [vmem:[#allocation1] sm:$0xff pattern:$0x75316420]  ;;  %v379_v43 = vld.sshfl [vmem:[#allocation1 + $0x8] sm:$0xff pattern:$0x75316420] }
  0x47   :  { %401 = vst [vmem:[#allocation1 + $0x1] ss:$2 sm:$0xff] %v225_v12 }
  0x49   :  { %v380_v55 = vld.sshfl [vmem:[#allocation1 + $0x10] sm:$0xff pattern:$0x75316420] }
  0x4a   :  { %403 = vst [vmem:[#allocation1 + $0x11] ss:$2 sm:$0xff] %v397_v54 }
  0x4e   :  { %v404_v49 = vld.sshfl [vmem:[#allocation1] sm:$0xff pattern:$0x75316420]  ;;  %v405_v50 = vld.sshfl [vmem:[#allocation1 + $0x8] sm:$0xff pattern:$0x75316420] }
  0x4f   :  { %426 = vst [vmem:[#allocation1] ss:$2 sm:$0xff] %v225_v12 }
  0x51   :  { %v406_v58 = vld.sshfl [vmem:[#allocation1 + $0x10] sm:$0xff pattern:$0x75316420] }
  0x52   :  { %428 = vst [vmem:[#allocation1 + $0x10] ss:$2 sm:$0xff] %v423_v57 }
  0x56   :  { %v429_v53 = vld.sshfl [vmem:[#allocation1] sm:$0xff pattern:$0x75316420]  ;;  %v430_v56 = vld.sshfl [vmem:[#allocation1 + $0x8] sm:$0xff pattern:$0x75316420] }
  0x57   :  { %432 = vrot.lane.b32.xlu1 %v429_v53, %s1100_s16  ;;  %452 = vst [vmem:[#allocation1] ss:$2 sm:$0xff] %v1206_v61 }
  0x59   :  { %v431_v60 = vld.sshfl [vmem:[#allocation1 + $0x10] sm:$0xff pattern:$0x75316420] }
  0x5a   :  { %436 = vrot.lane.b32.xlu2 %v431_v60, %s1100_s16  ;;  %454 = vst [vmem:[#allocation1 + $0x10] ss:$2 sm:$0xff] %v449_v59 }
  0x5e   :  { %v455_v1 = vld.sshfl [vmem:[#allocation1] sm:$0xff pattern:$0x75316420] }
  0x5f   :  { %434 = vrot.lane.b32.xlu1 %v430_v56, %s1100_s16  ;;  %461 = vst [vmem:[#allocation2 + $0x18] sm:$0xf] %v455_v1 }
  0x61   :  { %v1214_v63 = vld.sshfl [vmem:[#allocation1 + $0x10] sm:$0xff pattern:$0x75316420] }
  0x62   :  { %471 = vst [vmem:[#allocation1 + $0x11] ss:$2 sm:$0xff] %v465_v62  ;;  %381 = vrot.lane.b32.xlu2 %v378_v42, %s1098_s1 }
  0x67   :  { %385 = vrot.lane.b32.xlu1 %v380_v55, %s1098_s1 }
  0x6a   :  { %407 = vrot.lane.b32.xlu2 %v404_v49, %s1104_s20 }
  0x6f   :  { %409 = vrot.lane.b32.xlu1 %v405_v50, %s1104_s20 }
  0x72   :  { %411 = vrot.lane.b32.xlu2 %v406_v58, %s1104_s20 }
  0x77   :  { %330 = vrot.lane.b32.xlu1 %v1189_v27, %s1099_s15 }
  0x7a   :  { %332 = vrot.lane.b32.xlu2 %v1191_v28, %s1099_s15 }
  0x7f   :  { %356 = vrot.lane.b32.xlu1 %v1193_v34, %s1101_s17 }
  0x82   :  { %358 = vrot.lane.b32.xlu2 %v1195_v35, %s1101_s17 }
  0x87   :  { %279 = vrot.lane.b32.xlu1 %v1177_v18, %s1102_s18 }
  0x8a   :  { %281 = vrot.lane.b32.xlu2 %v1179_v19, %s1102_s18 }
  0x8b   :  { %v1168_v2 = vpop.f32.mrf.mxu0 }
  0x8c   :  { %v81_v3 = vmul.f32 %v1168_v2, %v1168_v2 }
  0x8e   :  { %v83_v4 = vsel %vm82_vm1, %v81_v3, 0.0  ;;  %v456_v3 = vld.sshfl [vmem:[#allocation1 + $0x8] sm:$0xff pattern:$0x75316420] }
  0x8f   :  { %84 = vadd.xlane.f32.xlu0 %v83_v4  ;;  %469 = vst [vmem:[#allocation1 + $0x1] ss:$2 sm:$0xff] %v1206_v61  ;;  %v1220_v4 = vld.sshfl [vmem:[#allocation1 + $0x10] sm:$0xff pattern:$0x75316420]  ;;  %305 = vrot.lane.b32.xlu1 %v1183_v22, %s1103_s19 }
  0x90   :  { %462 = vst [vmem:[#allocation2 + $0x20] sm:$0xf] %v456_v3 }
  0x91   :  { %495 = vst [vmem:[#allocation1 + $0x10] ss:$2 sm:$0xff] %v490_v0 }
  0x92   :  { %307 = vrot.lane.b32.xlu2 %v1185_v23, %s1103_s19 }
  0x97   :  { %253 = vrot.lane.b32.xlu1 %v1173_v15, %s1105_s21  ;;  %v1106_v15 = vmov 0.0  }
  0x98   :  { %219 = vst.msk [vmem:[#allocation2 + $0xd0] sm:$0xf] %vm218_vm9, %v1106_v15 }
  0x99   :  { %224 = vst.msk [vmem:[#allocation2 + $0xe8] sm:$0xf] %vm218_vm9, %v1106_v15 }
  0x9a   :  { %255 = vrot.lane.b32.xlu2 %v1175_v16, %s1105_s21  ;;  %217 = vst.msk [vmem:[#allocation2 + $0xa0] sm:$0xff] %vm213_vm10, %v1106_v15 }
  0x9b   :  { %214 = vst.msk [vmem:[#allocation2 + $0x10] sm:$0xff] %vm213_vm10, %v1106_v15 }
  0x9c   :  { %215 = vst.msk [vmem:[#allocation2 + $0x40] sm:$0xff] %vm213_vm10, %v1106_v15 }
  0x9d   :  { %216 = vst.msk [vmem:[#allocation2 + $0x70] sm:$0xff] %vm213_vm10, %v1106_v15 }
  0x9e   :  { %220 = vst.msk [vmem:[#allocation2 + $0x28] sm:$0xff] %vm213_vm10, %v1106_v15 }
  0x9f   :  { %221 = vst.msk [vmem:[#allocation2 + $0x58] sm:$0xff] %vm213_vm10, %v1106_v15 }
  0xa0   :  { %222 = vst.msk [vmem:[#allocation2 + $0x88] sm:$0xff] %vm213_vm10, %v1106_v15 }
  0xa1   :  { %223 = vst.msk [vmem:[#allocation2 + $0xb8] sm:$0xff] %vm213_vm10, %v1106_v15 }
  0xa2   :  { %241 = vst.msk [vmem:[#allocation2 + $0x10] sm:$0xf] %vm240_vm11, %v1181_v20 }
  0xa3   :  { %383 = vrot.lane.b32.xlu0 %v379_v43, %s1098_s1  ;;  %v637_v43 = vld [vmem:[#allocation6 + $0x14] sm:$0xf]  ;;  %463 = vst.msk [vmem:[#allocation2 + $0x28] sm:$0xf] %vm240_vm11, %v1214_v63 }
  0xab   :  { %334 = vrot.lane.b32.xlu0 %v329_v47, %s1099_s15 }
  0xb3   :  { %360 = vrot.lane.b32.xlu0 %v355_v52, %s1101_s17 }
  0xb4   :  { %v437_v16 = vpop.permute.xlu2 %436 }
  0xb5   :  { %446 = vst.msk [vmem:[#allocation2 + $0xd0] sm:$0xf] %vm240_vm11, %v437_v16 }
  0xbb   :  { %283 = vrot.lane.b32.xlu0 %v278_v30, %s1102_s18 }
  0xc3   :  { %309 = vrot.lane.b32.xlu0 %v304_v38, %s1103_s19  ;;  %v588_v38 = vld [vmem:[#allocation6 + $0x14] sm:$0xf] }
  0xc9   :  { %v433_v47 = vpop.permute.xlu1 %432 }
  0xcb   :  { %257 = vrot.lane.b32.xlu0 %v1187_v25, %s1105_s21 }
  0xd1   :  { %v435_v50 = vpop.permute.xlu1 %434 }
  0xd2   :  { %v439_v51 = vsel %vm438_vm13, %v433_v47, %v435_v50  ;;  %v440_v52 = vsel %vm438_vm13, %v435_v50, %v437_v16 }
  0xd3   :  { %444 = vst [vmem:[#allocation2 + $0xc0] sm:$0xf] %v439_v51 }
  0xd4   :  { %445 = vst [vmem:[#allocation2 + $0xc8] sm:$0xf] %v440_v52 }
  0xd9   :  { %v386_v54 = vpop.permute.xlu1 %385 }
  0xda   :  { %395 = vst.msk [vmem:[#allocation2 + $0xa0] sm:$0xf] %vm240_vm11, %v386_v54 }
  0xe1   :  { %v410_v57 = vpop.permute.xlu1 %409 }
 0x102   :  { %v85_v5 = vpop.xlane.xlu0 %84 }
 0x103   :  { %v86_v6 = vrot.slane %v85_v5, 4 }
 0x105   :  { %v87_v7 = vadd.f32 %v86_v6, %v85_v5  ;;  %v1223_v5 = vld.sshfl [vmem:[#allocation1] sm:$0xff pattern:$0x75316420]  ;;  %v1225_v6 = vld.sshfl [vmem:[#allocation1 + $0x8] sm:$0xff pattern:$0x75316420] }
 0x106   :  { %493 = vst [vmem:[#allocation1] ss:$2 sm:$0xff] %v1206_v61 }
 0x107   :  { %v88_v8 = vrot.slane %v87_v7, 2 }
 0x109   :  { %v89_v9 = vadd.f32 %v88_v8, %v87_v7  ;;  %v514_v8 = vld [vmem:[#allocation6 + $0x14] sm:$0xf] }
 0x10b   :  { %v90_v10 = vrot.slane %v89_v9, 1 }
 0x10d   :  { %v91_v11 = vadd.f32 %v90_v10, %v89_v9  ;;  %v1230_v9 = vld.sshfl [vmem:[#allocation1 + $0x10] sm:$0xff pattern:$0x75316420]  ;;  %v1233_v10 = vld.sshfl [vmem:[#allocation1] sm:$0xff pattern:$0x75316420] }
 0x10e   :  { %520 = vst [vmem:[#allocation1 + $0x11] ss:$2 sm:$0xff] %v514_v8 }
 0x10f   :  { %925 = vpush %v91_v11  ;;  %v1235_v11 = vld.sshfl [vmem:[#allocation1 + $0x8] sm:$0xff pattern:$0x75316420] }
 0x110   :  { %518 = vst [vmem:[#allocation1 + $0x1] ss:$2 sm:$0xff] %v1206_v61 }
 0x115   :  { %v1240_v21 = vld.sshfl [vmem:[#allocation1 + $0x10] sm:$0xff pattern:$0x75316420]  ;;  %v384_v20 = vpop.permute.xlu0 %383 }
 0x116   :  { %544 = vst [vmem:[#allocation1 + $0x10] ss:$2 sm:$0xff] %v539_v14  ;;  %v389_v55 = vsel %vm387_vm12, %v384_v20, %v386_v54 }
 0x117   :  { %v1244_v27 = vld.sshfl [vmem:[#allocation1] sm:$0xff pattern:$0x75316420]  ;;  %v1246_v29 = vld.sshfl [vmem:[#allocation1 + $0x8] sm:$0xff pattern:$0x75316420] }
 0x118   :  { %542 = vst [vmem:[#allocation1] ss:$2 sm:$0xff] %v1206_v61 }
 0x119   :  { %394 = vst [vmem:[#allocation2 + $0x98] sm:$0xf] %v389_v55 }
 0x11d   :  { %v547_v34 = vld.sshfl [vmem:[#allocation1 + $0x10] sm:$0xff pattern:$0x75316420]  ;;  %v335_v0 = vpop.permute.xlu0 %334 }
 0x11e   :  { %552 = vrot.lane.b32.xlu2 %v547_v34, %s1099_s15  ;;  %344 = vst.msk [vmem:[#allocation2 + $0x70] sm:$0xf] %vm240_vm11, %v335_v0 }
 0x11f   :  { %v546_v36 = vld.sshfl [vmem:[#allocation1 + $0x8] sm:$0xff pattern:$0x75316420] }
 0x125   :  { %v361_v14 = vpop.permute.xlu0 %360 }
 0x126   :  { %501 = vrot.lane.b32.xlu2 %v1235_v11, %s1102_s18  ;;  %370 = vst.msk [vmem:[#allocation2 + $0x70] sm:$0xf0] %vm267_vm14, %v361_v14 }
 0x140   :  { %s926_s0 = spop %925 }
 0x141   :  { %v93_v26 = vstv %s926_s0 }
 0x142   :  { %956 = vrsqrt.f32 %v93_v26  ;;  %vm101_vm2 = vcmp.eq.f32.partialorder %v93_v26, inf  ;;  %v104_v44 = vand.u32 2147483648, %v93_v26  ;;  %vm103_vm3 = vcmp.eq.f32.partialorder %v93_v26, 0.0 }
 0x148   :  { %v957_v31 = vpop.eup %956 }
 0x149   :  { %v95_v32 = vmul.f32 %v957_v31, %v93_v26 }
 0x14b   :  { %v96_v33 = vmul.f32 %v957_v31, %v95_v32  ;;  %v563_v32 = vld [vmem:[#allocation6 + $0x14] sm:$0xf] }
 0x14c   :  { %569 = vst [vmem:[#allocation1 + $0x11] ss:$2 sm:$0xff] %v563_v32 }
 0x14d   :  { %v97_v37 = vmul.f32 0.5, %v96_v33 }
 0x14f   :  { %v98_v39 = vsub.f32 1.5, %v97_v37  ;;  %v1256_v37 = vld.sshfl [vmem:[#allocation1] sm:$0xff pattern:$0x75316420] }
 0x150   :  { %567 = vst [vmem:[#allocation1 + $0x1] ss:$2 sm:$0xff] %v1206_v61 }
 0x151   :  { %v99_v40 = vmul.f32 %v957_v31, %v98_v39  ;;  %v612_v39 = vld [vmem:[#allocation6 + $0x14] sm:$0xf] }
 0x153   :  { %v100_v41 = vmul.f32 %v99_v40, %v93_v26  ;;  %v572_v22 = vld.sshfl [vmem:[#allocation1 + $0x10] sm:$0xff pattern:$0x75316420] }
 0x154   :  { %593 = vst [vmem:[#allocation1 + $0x10] ss:$2 sm:$0xff] %v588_v38 }
 0x155   :  { %v102_v46 = vsel %vm101_vm2, %v93_v26, %v100_v41  ;;  %vm694_vm2 = vcmask 1043456  }
 0x156   :  { %v105_v48 = vsel %vm103_vm3, %v104_v44, %v102_v46  ;;  %vm285_vm3 = vcmask 1031168  }
 0x157   :  { %927 = vpush %v105_v48  ;;  %v571_v35 = vld.sshfl [vmem:[#allocation1 + $0x8] sm:$0xff pattern:$0x75316420]  ;;  %v382_v48 = vpop.permute.xlu2 %381 }
 0x158   :  { %v388_v49 = vsel %vm387_vm12, %v382_v48, %v384_v20 }
 0x159   :  { %393 = vst [vmem:[#allocation2 + $0x90] sm:$0xf] %v388_v49 }
 0x15b   :  { %v596_v40 = vld.sshfl [vmem:[#allocation1 + $0x10] sm:$0xff pattern:$0x75316420] }
 0x15c   :  { %601 = vrot.lane.b32.xlu1 %v596_v40, %s1098_s1  ;;  %618 = vst [vmem:[#allocation1 + $0x11] ss:$2 sm:$0xff] %v612_v39 }
 0x15f   :  { %v408_v53 = vpop.permute.xlu2 %407 }
 0x160   :  { %v414_v58 = vsel %vm413_vm15, %v408_v53, %v410_v57 }
 0x161   :  { %419 = vst [vmem:[#allocation2 + $0x90] sm:$0xf0] %v414_v58 }
 0x163   :  { %v621_v19 = vld.sshfl [vmem:[#allocation1 + $0x10] sm:$0xff pattern:$0x75316420] }
 0x164   :  { %550 = vrot.lane.b32.xlu1 %v546_v36, %s1099_s15  ;;  %642 = vst [vmem:[#allocation1 + $0x10] ss:$2 sm:$0xff] %v637_v43 }
 0x167   :  { %v412_v56 = vpop.permute.xlu2 %411 }
 0x168   :  { %421 = vst.msk [vmem:[#allocation2 + $0xa0] sm:$0xf0] %vm267_vm14, %v412_v56  ;;  %v415_v59 = vsel %vm413_vm15, %v410_v57, %v412_v56  ;;  %v679_v8 = vld [vmem:[#allocation2 + $0x90] sm:$0xff] }
 0x169   :  { %420 = vst [vmem:[#allocation2 + $0x98] sm:$0xf0] %v415_v59 }
 0x16b   :  { %v645_v46 = vld.sshfl [vmem:[#allocation1 + $0x10] sm:$0xff pattern:$0x75316420] }
 0x16c   :  { %577 = vrot.lane.b32.xlu1 %v572_v22, %s1101_s17 }
 0x16f   :  { %v333_v60 = vpop.permute.xlu2 %332 }
 0x177   :  { %v359_v63 = vpop.permute.xlu2 %358 }
 0x17f   :  { %v282_v11 = vpop.permute.xlu2 %281 }
 0x188   :  { %s928_s22 = spop %927 }
 0x189   :  { %s107_s23 = sadd.f32 1e-12, %s928_s22 }
 0x18b   :  { %v108_v7 = vstv %s107_s23 }
 0x18c   :  { %958 = vrcp.f32 %v108_v7  ;;  %v118_v24 = vand.u32 2147483647, %v108_v7  ;;  %v120_v25 = vand.u32 2147483648, %v108_v7  ;;  %vm114_vm6 = vweird.f32 %v108_v7 }
 0x18e   :  { %v121_v18 = vor.u32 1.1754944e-38, %v120_v25  ;;  %vm119_vm8 = vcmp.eq.f32.partialorder %v118_v24, 8.507059e+37 }
 0x192   :  { %v959_v12 = vpop.eup %958 }
 0x193   :  { %v110_v13 = vmul.f32 %v959_v12, %v108_v7  ;;  %vm115_vm5 = vweird.f32 %v959_v12  ;;  %v686_v7 = vld [vmem:[#allocation2 + $0xc8] sm:$0xf] }
 0x194   :  { %vm116_vm7 = vmor %vm114_vm6, %vm115_vm5  ;;  %915 = vmatpush.msk.msra.mxu3 %vm694_vm2, %v686_v7  ;;  %vm311_vm5 = vcmask 900096   ;;  %vm259_vm6 = vcmask 1039360  }
 0x195   :  { %v111_v17 = vsub.f32 1.0, %v110_v13 }
 0x197   :  { %v112_v26 = vmul.f32 %v959_v12, %v111_v17 }
 0x199   :  { %v113_v30 = vadd.f32 %v959_v12, %v112_v26  ;;  %v284_v26 = vpop.permute.xlu0 %283 }
 0x19a   :  { %293 = vst.msk [vmem:[#allocation2 + $0x40] sm:$0xf] %vm240_vm11, %v284_v26 }
 0x19b   :  { %v117_v31 = vsel %vm116_vm7, %v959_v12, %v113_v30  ;;  %v681_v30 = vld [vmem:[#allocation2 + $0xa0] sm:$0xff]  ;;  %vm152_vm7 = vcmask 57344  }
 0x19c   :  { %v122_v33 = vsel %vm119_vm8, %v121_v18, %v117_v31 }
 0x19d   :  { %v123_v28 = vmul.f32 %v122_v33, %v1168_v2  ;;  %v1263_v2 = vld.sshfl [vmem:[#allocation1] sm:$0xff pattern:$0x75316420]  ;;  %v675_v33 = vld [vmem:[#allocation2 + $0x70] sm:$0xff] }
 0x19e   :  { %591 = vst [vmem:[#allocation1] ss:$2 sm:$0xff] %v1206_v61 }
 0x19f   :  { %912 = vmatmul.msk.f32.vlgmr.msra.gmra.mxu1 %vm124_vm4, %v123_v28  ;;  %195 = vst.msk [vmem:[#allocation11] sm:$0x1] %vm82_vm1, %v123_v28  ;;  %vm362_vm1 = vcmask 883712  }
 0x1a0   :  { %v364_v17 = vsel %vm362_vm1, %v359_v63, %v361_v14 }
 0x1a1   :  { %369 = vst [vmem:[#allocation2 + $0x68] sm:$0xf0] %v364_v17  ;;  %v310_v34 = vpop.permute.xlu0 %309 }
 0x1a2   :  { %319 = vst.msk [vmem:[#allocation2 + $0x40] sm:$0xf0] %vm267_vm14, %v310_v34 }
 0x1a5   :  { %v595_v41 = vld.sshfl [vmem:[#allocation1 + $0x8] sm:$0xff pattern:$0x75316420]  ;;  %v1269_v42 = vld.sshfl [vmem:[#allocation1] sm:$0xff pattern:$0x75316420] }
 0x1a6   :  { %599 = vrot.lane.b32.xlu0 %v595_v41, %s1098_s1  ;;  %616 = vst [vmem:[#allocation1 + $0x1] ss:$2 sm:$0xff] %v1206_v61 }
 0x1a9   :  { %v258_v40 = vpop.permute.xlu0 %257  ;;  %v669_v41 = vld [vmem:[#allocation2 + $0x40] sm:$0xff] }
 0x1aa   :  { %268 = vst.msk [vmem:[#allocation2 + $0x10] sm:$0xf0] %vm267_vm14, %v258_v40 }
 0x1ad   :  { %v619_v23 = vld.sshfl [vmem:[#allocation1] sm:$0xff pattern:$0x75316420]  ;;  %v620_v44 = vld.sshfl [vmem:[#allocation1 + $0x8] sm:$0xff pattern:$0x75316420] }
 0x1ae   :  { %575 = vrot.lane.b32.xlu0 %v571_v35, %s1101_s17  ;;  %640 = vst [vmem:[#allocation1] ss:$2 sm:$0xff] %v1206_v61  ;;  %624 = vrot.lane.b32.xlu2 %v620_v44, %s1104_s20  ;;  %v331_v61 = vpop.permute.xlu1 %330 }
 0x1af   :  { %v337_v62 = vsel %vm336_vm0, %v331_v61, %v333_v60 }
 0x1b0   :  { %342 = vst [vmem:[#allocation2 + $0x60] sm:$0xf] %v337_v62 }
 0x1b1   :  { %v663_v49 = vld [vmem:[#allocation2 + $0x10] sm:$0xff] }
 0x1b5   :  { %v644_v45 = vld.sshfl [vmem:[#allocation1 + $0x8] sm:$0xff pattern:$0x75316420]  ;;  %v643_v57 = vld.sshfl [vmem:[#allocation1] sm:$0xff pattern:$0x75316420] }
 0x1b6   :  { %626 = vrot.lane.b32.xlu0 %v621_v19, %s1104_s20  ;;  %648 = vrot.lane.b32.xlu1 %v644_v45, %s1100_s16  ;;  %v357_v1 = vpop.permute.xlu1 %356 }
 0x1b7   :  { %650 = vrot.lane.b32.xlu2 %v645_v46, %s1100_s16  ;;  %v363_v3 = vsel %vm362_vm1, %v357_v1, %v359_v63 }
 0x1b8   :  { %368 = vst [vmem:[#allocation2 + $0x60] sm:$0xf0] %v363_v3 }
 0x1be   :  { %526 = vrot.lane.b32.xlu1 %v1246_v29, %s1103_s19  ;;  %v280_v12 = vpop.permute.xlu1 %279  ;;  %v687_v29 = vld [vmem:[#allocation2 + $0xd0] sm:$0xf] }
 0x1bf   :  { %528 = vrot.lane.b32.xlu2 %v1240_v21, %s1103_s19  ;;  %v286_v13 = vsel %vm285_vm3, %v280_v12, %v282_v11  ;;  %v308_v21 = vpop.permute.xlu2 %307  ;;  %917 = vmatpush.msk.msrb.mxu0 %vm694_vm2, %v687_v29  ;;  %v673_v51 = vld [vmem:[#allocation2 + $0x60] sm:$0xff] }
 0x1c0   :  { %291 = vst [vmem:[#allocation2 + $0x30] sm:$0xf] %v286_v13  ;;  %v313_v36 = vsel %vm311_vm5, %v308_v21, %v310_v34 }
 0x1c1   :  { %765 = vmatpush.msrb.mxu0 %v681_v30  ;;  %318 = vst [vmem:[#allocation2 + $0x38] sm:$0xf0] %v313_v36 }
 0x1c3   :  { %766 = vmatpush.msrb.mxu0 %v675_v33 }
 0x1c5   :  { %767 = vmatpush.msrb.mxu0 %v669_v41 }
 0x1c6   :  { %477 = vrot.lane.b32.xlu1 %v1225_v6, %s1105_s21  ;;  %v338_v6 = vsel %vm336_vm0, %v333_v60, %v335_v0  ;;  %v306_v24 = vpop.permute.xlu1 %305 }
 0x1c7   :  { %479 = vrot.lane.b32.xlu2 %v1220_v4, %s1105_s21  ;;  %v685_v4 = vld [vmem:[#allocation2 + $0xc0] sm:$0xf]  ;;  %343 = vst [vmem:[#allocation2 + $0x68] sm:$0xf] %v338_v6  ;;  %v312_v25 = vsel %vm311_vm5, %v306_v24, %v308_v21  ;;  %v256_v18 = vpop.permute.xlu2 %255  ;;  %768 = vmatpush.msrb.mxu0 %v663_v49 }
 0x1c8   :  { %913 = vmatpush.msk.msra.mxu2 %vm694_vm2, %v685_v4  ;;  %317 = vst [vmem:[#allocation2 + $0x30] sm:$0xf0] %v312_v25  ;;  %v261_v15 = vsel %vm259_vm6, %v256_v18, %v258_v40 }
 0x1c9   :  { %266 = vst [vmem:[#allocation2 + $0x8] sm:$0xf0] %v261_v15 }
 0x1ca   :  { %725 = vmatpush.msra.mxu2 %v679_v8 }
 0x1cc   :  { %726 = vmatpush.msra.mxu2 %v673_v51 }
 0x1ce   :  { %622 = vrot.lane.b32.xlu1 %v619_v23, %s1104_s20  ;;  %v674_v31 = vld [vmem:[#allocation2 + $0x68] sm:$0xff]  ;;  %v254_v32 = vpop.permute.xlu1 %253 }
 0x1cf   :  { %548 = vrot.lane.b32.xlu2 %v1256_v37, %s1099_s15  ;;  %v260_v28 = vsel %vm259_vm6, %v254_v32, %v256_v18  ;;  %v553_v22 = vpop.permute.xlu2 %552  ;;  %v667_v53 = vld [vmem:[#allocation2 + $0x30] sm:$0xff]  ;;  %s1111_s15 = smov 384  }
 0x1d0   :  { %265 = vst [vmem:[#allocation2] sm:$0xf0] %v260_v28  ;;  %v662_v50 = vld [vmem:[#allocation2 + $0x8] sm:$0xff]  ;;  %727 = vmatpush.msra.mxu2 %v667_v53 }
 0x1d1   :  { %561 = vst.msk [vmem:[#allocation2 + $0x88] sm:$0xf] %vm240_vm11, %v553_v22 }
 0x1d6   :  { %499 = vrot.lane.b32.xlu1 %v1233_v10, %s1102_s18  ;;  %v680_v10 = vld [vmem:[#allocation2 + $0x98] sm:$0xff]  ;;  %v602_v39 = vpop.permute.xlu1 %601 }
 0x1d7   :  { %524 = vrot.lane.b32.xlu2 %v1244_v27, %s1103_s19  ;;  %745 = vmatpush.msra.mxu3 %v680_v10  ;;  %v287_v27 = vsel %vm285_vm3, %v282_v11, %v284_v26  ;;  %610 = vst.msk [vmem:[#allocation2 + $0xb8] sm:$0xf] %vm240_vm11, %v602_v39  ;;  %v1339_v43 = vpop.permute.xlu2 %501  ;;  %v661_v54 = vld [vmem:[#allocation2] sm:$0xff] }
 0x1d8   :  { %292 = vst [vmem:[#allocation2 + $0x38] sm:$0xf] %v287_v27  ;;  %728 = vmatpush.msra.mxu2 %v661_v54 }
 0x1d9   :  { %746 = vmatpush.msra.mxu3 %v674_v31 }
 0x1de   :  { %v551_v23 = vpop.permute.xlu1 %550 }
 0x1df   :  { %v668_v19 = vld [vmem:[#allocation2 + $0x38] sm:$0xff]  ;;  %v555_v45 = vsel %vm336_vm0, %v551_v23, %v553_v22 }
 0x1e0   :  { %747 = vmatpush.msra.mxu3 %v668_v19  ;;  %560 = vst [vmem:[#allocation2 + $0x80] sm:$0xf] %v555_v45 }
 0x1e2   :  { %748 = vmatpush.msra.mxu3 %v662_v50 }
 0x1e6   :  { %v578_v47 = vpop.permute.xlu1 %577 }
 0x1e7   :  { %586 = vst.msk [vmem:[#allocation2 + $0x88] sm:$0xf0] %vm267_vm14, %v578_v47 }
 0x1ee   :  { %v678_v12 = vld [vmem:[#allocation2 + $0x88] sm:$0xff] }
 0x208   :  { %v625_v46 = vpop.permute.xlu2 %624 }
 0x211   :  { %v651_v52 = vpop.permute.xlu2 %650 }
 0x212   :  { %659 = vst.msk [vmem:[#allocation2 + $0xe8] sm:$0xf] %vm240_vm11, %v651_v52 }
 0x218   :  { %v1341_v44 = vpop.permute.xlu0 %599 }
 0x219   :  { %v604_v16 = vsel %vm387_vm12, %v1341_v44, %v602_v39  ;;  %v690_v59 = vld [vmem:[#allocation2 + $0xe8] sm:$0xf]  ;;  %v529_v60 = vpop.permute.xlu2 %528 }
 0x21a   :  { %609 = vst [vmem:[#allocation2 + $0xb0] sm:$0xf] %v604_v16  ;;  %923 = vmatpush.msk.msrb.mxu3 %vm694_vm2, %v690_v59  ;;  %v1107_v16 = vmov 0  }
 0x21b   :  { %537 = vst.msk [vmem:[#allocation2 + $0x58] sm:$0xf0] %vm267_vm14, %v529_v60  ;;  %954 = vset.pattern.permute.xlu1 %v1107_v16  ;;  %955 = vset.pattern.permute.xlu0 %v1107_v16 }
 0x21c   :  { %v1330_v37 = vpop.f32.mrf.mxu1 }
 0x21d   :  { %v151_v38 = vmul.f32 %v1330_v37, %v1330_v37 }
 0x21f   :  { %v153_v35 = vsel %vm152_vm7, %v151_v38, 0.0  ;;  %v660_v38 = vld [vmem:[#allocation3] sm:$0xff] }
 0x220   :  { %154 = vadd.xlane.f32.xlu0 %v153_v35  ;;  %v1346_v48 = vpop.permute.xlu0 %575  ;;  %914 = vmatmul.msk.f32.vlgmr.msra.gmra.mxu2 %vm124_vm4, %v660_v38 }
 0x221   :  { %v580_v20 = vsel %vm362_vm1, %v1346_v48, %v578_v47  ;;  %v480_v4 = vpop.permute.xlu2 %479  ;;  %916 = vmatmul.msk.f32.vlgmr.msra.gmra.mxu3 %vm124_vm4, %v660_v38  ;;  %918 = vmatmul.msk.f32.vlgmr.msrb.gmra.mxu0 %vm124_vm4, %v660_v38 }
 0x222   :  { %585 = vst [vmem:[#allocation2 + $0x80] sm:$0xf0] %v580_v20 }
 0x223   :  { %488 = vst.msk [vmem:[#allocation2 + $0x28] sm:$0xf0] %vm267_vm14, %v480_v4 }
 0x228   :  { %v1354_v55 = vpop.permute.xlu1 %648  ;;  %v627_v56 = vpop.permute.xlu0 %626 }
 0x229   :  { %v653_v58 = vsel %vm438_vm13, %v1354_v55, %v651_v52  ;;  %635 = vst.msk [vmem:[#allocation2 + $0xb8] sm:$0xf0] %vm267_vm14, %v627_v56  ;;  %v677_v0 = vld [vmem:[#allocation2 + $0x80] sm:$0xff]  ;;  %v549_v8 = vpop.permute.xlu2 %548 }
 0x22a   :  { %658 = vst [vmem:[#allocation2 + $0xe0] sm:$0xf] %v653_v58  ;;  %v554_v11 = vsel %vm336_vm0, %v549_v8, %v551_v23  ;;  %v666_v33 = vld [vmem:[#allocation2 + $0x28] sm:$0xff] }
 0x22b   :  { %559 = vst [vmem:[#allocation2 + $0x78] sm:$0xf] %v554_v11 }
 0x230   :  { %v684_v61 = vld [vmem:[#allocation2 + $0xb8] sm:$0xff]  ;;  %v527_v62 = vpop.permute.xlu1 %526 }
 0x231   :  { %v689_v63 = vld [vmem:[#allocation2 + $0xe0] sm:$0xf]  ;;  %825 = vmatpush.msrb.mxu3 %v684_v61  ;;  %v531_v1 = vsel %vm311_vm5, %v527_v62, %v529_v60 }
 0x232   :  { %921 = vmatpush.msk.msrb.mxu2 %vm694_vm2, %v689_v63  ;;  %536 = vst [vmem:[#allocation2 + $0x50] sm:$0xf0] %v531_v1 }
 0x233   :  { %826 = vmatpush.msrb.mxu3 %v678_v12 }
 0x234   :  { %503 = vrot.lane.b32.xlu0 %v1230_v9, %s1102_s18  ;;  %v629_v9 = vsel %vm413_vm15, %v625_v46, %v627_v56 }
 0x235   :  { %634 = vst [vmem:[#allocation2 + $0xb0] sm:$0xf0] %v629_v9 }
 0x238   :  { %v478_v6 = vpop.permute.xlu1 %477 }
 0x239   :  { %v482_v7 = vsel %vm259_vm6, %v478_v6, %v480_v4 }
 0x23a   :  { %487 = vst [vmem:[#allocation2 + $0x20] sm:$0xf0] %v482_v7 }
 0x23c   :  { %646 = vrot.lane.b32.xlu0 %v643_v57, %s1100_s16  ;;  %v683_v3 = vld [vmem:[#allocation2 + $0xb0] sm:$0xff]  ;;  %s1112_s16 = smov 24  }
 0x23d   :  { %805 = vmatpush.msrb.mxu2 %v683_v3 }
 0x23f   :  { %806 = vmatpush.msrb.mxu2 %v677_v0 }
 0x240   :  { %v623_v10 = vpop.permute.xlu1 %622 }
 0x241   :  { %v665_v36 = vld [vmem:[#allocation2 + $0x20] sm:$0xff] }
 0x244   :  { %597 = vrot.lane.b32.xlu0 %v1269_v42, %s1098_s1  ;;  %v628_v42 = vsel %vm413_vm15, %v623_v10, %v625_v46  ;;  %s865_s1 = sshll.u32 %s1414_s5, 4  ;;  %s866_s1 = int_to_ptr.hbm [resolvable:$true] %s865_s1 }
 0x245   :  { %633 = vst [vmem:[#allocation2 + $0xa8] sm:$0xf0] %v628_v42 }
 0x248   :  { %v500_v13 = vpop.permute.xlu1 %499 }
 0x249   :  { %v505_v14 = vsel %vm285_vm3, %v500_v13, %v1339_v43 }
 0x24a   :  { %510 = vst [vmem:[#allocation2 + $0x48] sm:$0xf] %v505_v14 }
 0x24c   :  { %573 = vrot.lane.b32.xlu0 %v1263_v2, %s1101_s17  ;;  %v525_v2 = vpop.permute.xlu2 %524 }
 0x254   :  { %475 = vrot.lane.b32.xlu0 %v1223_v5, %s1105_s21  ;;  %v530_v5 = vsel %vm311_vm5, %v525_v2, %v527_v62 }
 0x255   :  { %535 = vst [vmem:[#allocation2 + $0x48] sm:$0xf0] %v530_v5 }
 0x25c   :  { %v670_v45 = vld [vmem:[#allocation2 + $0x48] sm:$0xff] }
 0x293   :  { %v155_v17 = vpop.xlane.xlu0 %154 }
 0x294   :  { %v156_v21 = vrot.slane %v155_v17, 4 }
 0x296   :  { %v157_v24 = vadd.f32 %v156_v21, %v155_v17 }
 0x298   :  { %v158_v25 = vrot.slane %v157_v24, 2 }
 0x29a   :  { %v159_v26 = vadd.f32 %v158_v25, %v157_v24 }
 0x29c   :  { %v160_v27 = vrot.slane %v159_v26, 1 }
 0x29e   :  { %v161_v29 = vadd.f32 %v160_v27, %v159_v26  ;;  %v770_v24 = vpop.f32.mrf.mxu0 }
 0x2a0   :  { %929 = vpush %v161_v29 }
 0x2a3   :  { %v730_v17 = vpop.f32.mrf.mxu2 }
 0x2a4   :  { %v750_v21 = vpop.f32.mrf.mxu3 }
 0x2a6   :  { %v504_v30 = vpop.permute.xlu0 %503 }
 0x2a7   :  { %v506_v18 = vsel %vm285_vm3, %v1339_v43, %v504_v30  ;;  %512 = vst.msk [vmem:[#allocation2 + $0x58] sm:$0xf] %vm240_vm11, %v504_v30 }
 0x2a8   :  { %511 = vst [vmem:[#allocation2 + $0x50] sm:$0xf] %v506_v18 }
 0x2ae   :  { %v647_v31 = vpop.permute.xlu0 %646  ;;  %v672_v32 = vld [vmem:[#allocation2 + $0x58] sm:$0xff] }
 0x2af   :  { %v652_v28 = vsel %vm438_vm13, %v647_v31, %v1354_v55  ;;  %v671_v34 = vld [vmem:[#allocation2 + $0x50] sm:$0xff]  ;;  %827 = vmatpush.msrb.mxu3 %v672_v32 }
 0x2b0   :  { %657 = vst [vmem:[#allocation2 + $0xd8] sm:$0xf] %v652_v28  ;;  %807 = vmatpush.msrb.mxu2 %v671_v34 }
 0x2b1   :  { %828 = vmatpush.msrb.mxu3 %v666_v33 }
 0x2b2   :  { %808 = vmatpush.msrb.mxu2 %v665_v36  ;;  %924 = vmatmul.msk.f32.vlgmr.msrb.gmra.mxu3 %vm124_vm4, %v660_v38 }
 0x2b3   :  { %922 = vmatmul.msk.f32.vlgmr.msrb.gmra.mxu2 %vm124_vm4, %v660_v38 }
 0x2b6   :  { %v598_v22 = vpop.permute.xlu0 %597 }
 0x2b7   :  { %v603_v35 = vsel %vm387_vm12, %v598_v22, %v1341_v44  ;;  %v688_v39 = vld [vmem:[#allocation2 + $0xd8] sm:$0xf] }
 0x2b8   :  { %608 = vst [vmem:[#allocation2 + $0xa8] sm:$0xf] %v603_v35  ;;  %919 = vmatpush.msk.msrb.mxu1 %vm694_vm2, %v688_v39  ;;  %v212_v44 = vld [vmem:[%s1413_s4] sm:$0xff] }
 0x2b9   :  { %842 = vperm.xlu1 %954, %v212_v44  }
 0x2be   :  { %v574_v40 = vpop.permute.xlu0 %573 }
 0x2bf   :  { %v579_v15 = vsel %vm362_vm1, %v574_v40, %v1346_v48  ;;  %v682_v41 = vld [vmem:[#allocation2 + $0xa8] sm:$0xff]  ;;  %vm853_vm1 = vcmask 261120  }
 0x2c0   :  { %584 = vst [vmem:[#allocation2 + $0x78] sm:$0xf0] %v579_v15  ;;  %785 = vmatpush.msrb.mxu1 %v682_v41 }
 0x2c6   :  { %v476_v19 = vpop.permute.xlu0 %475 }
 0x2c7   :  { %v481_v43 = vsel %vm259_vm6, %v476_v19, %v478_v6  ;;  %v676_v23 = vld [vmem:[#allocation2 + $0x78] sm:$0xff] }
 0x2c8   :  { %486 = vst [vmem:[#allocation2 + $0x18] sm:$0xf0] %v481_v43  ;;  %786 = vmatpush.msrb.mxu1 %v676_v23 }
 0x2ca   :  { %787 = vmatpush.msrb.mxu1 %v670_v45 }
 0x2cf   :  { %v664_v46 = vld [vmem:[#allocation2 + $0x18] sm:$0xff] }
 0x2d0   :  { %788 = vmatpush.msrb.mxu1 %v664_v46 }
 0x2d1   :  { %s930_s26 = spop %929  ;;  %920 = vmatmul.msk.f32.vlgmr.msrb.gmra.mxu1 %vm124_vm4, %v660_v38 }
 0x2d2   :  { %v163_v47 = vstv %s930_s26 }
 0x2d3   :  { %960 = vrsqrt.f32 %v163_v47  ;;  %vm171_vm8 = vcmp.eq.f32.partialorder %v163_v47, inf  ;;  %v174_v54 = vand.u32 2147483648, %v163_v47  ;;  %vm173_vm9 = vcmp.eq.f32.partialorder %v163_v47, 0.0 }
 0x2d9   :  { %v961_v48 = vpop.eup %960 }
 0x2da   :  { %v165_v20 = vmul.f32 %v961_v48, %v163_v47 }
 0x2dc   :  { %v166_v49 = vmul.f32 %v961_v48, %v165_v20 }
 0x2de   :  { %v167_v50 = vmul.f32 0.5, %v166_v49 }
 0x2e0   :  { %v168_v51 = vsub.f32 1.5, %v167_v50 }
 0x2e2   :  { %v169_v52 = vmul.f32 %v961_v48, %v168_v51 }
 0x2e4   :  { %v170_v53 = vmul.f32 %v169_v52, %v163_v47 }
 0x2e6   :  { %v172_v55 = vsel %vm171_vm8, %v163_v47, %v170_v53 }
 0x2e7   :  { %v175_v56 = vsel %vm173_vm9, %v174_v54, %v172_v55 }
 0x2e8   :  { %931 = vpush %v175_v56 }
 0x319   :  { %s932_s4 = spop %931 }
 0x31a   :  { %s177_s27 = sadd.f32 1e-12, %s932_s4  ;;  %v196_v57 = vstv %s932_s4 }
 0x31b   :  { %962 = vrcp.f32 %v196_v57  ;;  %v208_v63 = vand.u32 2147483648, %v196_v57  ;;  %v206_v0 = vand.u32 2147483647, %v196_v57  ;;  %vm202_vm10 = vweird.f32 %v196_v57 }
 0x31c   :  { %v178_v58 = vstv %s177_s27 }
 0x31d   :  { %964 = vrcp.f32 %v178_v58  ;;  %v190_v4 = vand.u32 2147483648, %v178_v58  ;;  %v188_v7 = vand.u32 2147483647, %v178_v58  ;;  %v209_v10 = vor.u32 1.1754944e-38, %v208_v63 }
 0x31e   :  { %vm184_vm13 = vweird.f32 %v178_v58  ;;  %vm207_vm14 = vcmp.eq.f32.partialorder %v206_v0, 8.507059e+37 }
 0x31f   :  { %v191_v12 = vor.u32 1.1754944e-38, %v190_v4  ;;  %vm189_vm0 = vcmp.eq.f32.partialorder %v188_v7, 8.507059e+37 }
 0x321   :  { %v963_v9 = vpop.eup %962 }
 0x322   :  { %v198_v59 = vmul.f32 %v963_v9, %v196_v57  ;;  %vm203_vm4 = vweird.f32 %v963_v9 }
 0x323   :  { %v965_v60 = vpop.eup %964  ;;  %vm204_vm12 = vmor %vm202_vm10, %vm203_vm4 }
 0x324   :  { %v180_v61 = vmul.f32 %v965_v60, %v178_v58  ;;  %v199_v62 = vsub.f32 1.0, %v198_v59  ;;  %vm185_vm11 = vweird.f32 %v965_v60 }
 0x325   :  { %vm186_vm15 = vmor %vm184_vm13, %vm185_vm11 }
 0x326   :  { %v181_v1 = vsub.f32 1.0, %v180_v61  ;;  %v200_v3 = vmul.f32 %v963_v9, %v199_v62 }
 0x328   :  { %v182_v6 = vmul.f32 %v965_v60, %v181_v1  ;;  %v201_v8 = vadd.f32 %v963_v9, %v200_v3 }
 0x32a   :  { %v183_v11 = vadd.f32 %v965_v60, %v182_v6  ;;  %v205_v42 = vsel %vm204_vm12, %v963_v9, %v201_v8 }
 0x32b   :  { %v210_v2 = vsel %vm207_vm14, %v209_v10, %v205_v42  ;;  %v843_v30 = vpop.permute.xlu1 %842 }
 0x32c   :  { %933 = vpush %v210_v2  ;;  %v187_v13 = vsel %vm186_vm15, %v965_v60, %v183_v11 }
 0x32d   :  { %v192_v5 = vsel %vm189_vm0, %v191_v12, %v187_v13 }
 0x32e   :  { %v193_v14 = vmul.f32 %v192_v5, %v1330_v37 }
 0x330   :  { %194 = vst.msk [vmem:[#allocation9] sm:$0x1] %vm152_vm7, %v193_v14 }
 0x331   :  { %882 = dma.vmem_to_hbm [thread:$0]  %s878_s29, 16, %s880_s9, [#allocation10]  }
 0x332   :  { %893 = dma.vmem_to_hbm [thread:$0]  %s889_s11, 16, %s891_s13, [#allocation10]  }
 0x335   :  { %v830_v27 = vpop.f32.mrf.mxu3 }
 0x336   :  { %v810_v26 = vpop.f32.mrf.mxu2 }
 0x34e   :  { %v790_v25 = vpop.f32.mrf.mxu1 }
 0x35d   :  { %s934_s6 = spop %933 }
 0x35e   :  { %v833_v29 = vstv %s934_s6 }
 0x35f   :  { %v834_v18 = vmul.f32 %v833_v29, %v730_v17  ;;  %v835_v31 = vmul.f32 %v833_v29, %v750_v21  ;;  %v836_v37 = vmul.f32 %v833_v29, %v770_v24  ;;  %v837_v32 = vmul.f32 %v833_v29, %v790_v25 }
 0x360   :  { %v838_v33 = vmul.f32 %v833_v29, %v810_v26  ;;  %v839_v28 = vmul.f32 %v833_v29, %v830_v27 }
 0x361   :  { %v845_v34 = vadd.f32 %v843_v30, %v834_v18  ;;  %v846_v36 = vadd.f32 %v843_v30, %v835_v31  ;;  %v847_v38 = vadd.f32 %v843_v30, %v836_v37  ;;  %v848_v22 = vadd.f32 %v843_v30, %v837_v32 }
 0x362   :  { %v849_v35 = vadd.f32 %v843_v30, %v838_v33  ;;  %v850_v39 = vadd.f32 %v843_v30, %v839_v28 }
 0x363   :  { %851 = vst [vmem:[#allocation8] sm:$0xff] %v845_v34 }
 0x364   :  { %852 = vst [vmem:[#allocation8 + $0x8] sm:$0xff] %v846_v36 }
 0x365   :  { %854 = vst.msk [vmem:[#allocation8 + $0x10] sm:$0xff] %vm853_vm1, %v847_v38 }
 0x366   :  { %856 = vst [vmem:[#allocation8 + $0x18] sm:$0xff] %v848_v22 }
 0x367   :  { %857 = vst [vmem:[#allocation8 + $0x20] sm:$0xff] %v849_v35 }
 0x368   :  { %858 = vst.msk [vmem:[#allocation8 + $0x28] sm:$0xff] %vm853_vm1, %v850_v39 }
 0x369   :  { %871 = dma.vmem_to_hbm [thread:$0]  %s864_s14, 768, %s866_s1, [#allocation5], %s1111_s15, %s1111_s15, %s1112_s16  }
 0x36a   :  { %1090 = dma.done.wait [#allocation5], 768  }
 0x36b   :  { %1091 = vsyncadd [#allocation5], 4294966528 }
 0x36c   :  { %1092 = dma.done.wait [#allocation10], 32  }
 0x36d   :  { %1093 = vsyncadd [#allocation10], 4294967264 }
 0x36e   :  { %906 = vsyncpa [#allocation4], 1 }
 0x36f   :  { %907 = vsyncpa [#allocation7], 1 }
 0x370   :  { %908 = vsyncpa [#allocation5], 1 }
 0x371   :  { %909 = vsyncpa [#allocation10], 1 }

</bundles_post_ra>
